<compile_context>
chip_gen: v7x
topology: tpu7x:2x2x1
jax: 0.10.0
libtpu: 0.0.40
codegen_flags: <defaults>
</compile_context>

<pallas_src>
import math

import jax
import jax.numpy as jnp
from jax.experimental import pallas as pl
from jax.experimental.pallas import tpu as pltpu


def _round_up(x, m):
    return (x + m - 1) // m * m


def lstm_cell_kernel(xh_ref, w_ref, b_ref, c0_ref, h1_ref, c1_ref):
    """One hidden-tile of the LSTM cell, entirely in VMEM.

    gates = [x|h0] @ [W_ih;W_hh] + bias        (single fused MXU matmul)
    f,i,o,g = split(gates, ht, axis=1)          (lane-aligned slices)
    c1 = sigmoid(f)*c0 + sigmoid(i)*tanh(g)
    h1 = sigmoid(o)*tanh(c1)
    """
    ht = c0_ref.shape[1]

    gates = jnp.dot(xh_ref[...], w_ref[...],
                    preferred_element_type=jnp.float32) + b_ref[...]

    # One wide EUP pass over the contiguous [f, i, o] slab, tanh over g.
    sig = jax.nn.sigmoid(gates[:, :3 * ht])
    g = jnp.tanh(gates[:, 3 * ht:])

    f = sig[:, 0 * ht:1 * ht]
    i = sig[:, 1 * ht:2 * ht]
    o = sig[:, 2 * ht:3 * ht]

    c1 = f * c0_ref[...] + i * g
    h1 = o * jnp.tanh(c1)

    c1_ref[...] = c1.astype(c1_ref.dtype)
    h1_ref[...] = h1.astype(h1_ref.dtype)


def lstm_cell(input_, h0, c0, weight_ih, weight_hh, bias,
              *, block_h=256, compute_dtype=jnp.float32):
    """Pallas LSTM cell.

    input_: (B, I); h0, c0: (B, H); weight_ih: (I, 4H); weight_hh: (H, 4H);
    bias: (4H,). Returns (h1, c1), each (B, H), float32.
    """
    batch, input_size = input_.shape
    hidden = h0.shape[1]
    f32 = jnp.float32

    # --- pad to TPU-native shapes -------------------------------------------
    bp = _round_up(max(batch, 8), 8)                       # sublane multiple
    ht = _round_up(min(block_h, _round_up(hidden, 128)), 128)  # hidden tile
    hp = _round_up(hidden, ht)                             # padded hidden
    n_tiles = hp // ht
    kp = _round_up(input_size + hp, 8)                     # fused K dim

    # fused [x | h0] operand (zero-padded; padded rows/cols contribute 0)
    xh = jnp.zeros((bp, kp), f32)
    xh = xh.at[:batch, :input_size].set(input_.astype(f32))
    xh = xh.at[:batch, input_size:input_size + hidden].set(h0.astype(f32))

    # fused weight [W_ih ; W_hh], gates grouped as (K, 4, Hp)
    w = jnp.zeros((kp, 4, hp), f32)
    w = w.at[:input_size, :, :hidden].set(
        weight_ih.astype(f32).reshape(input_size, 4, hidden))
    w = w.at[input_size:input_size + hidden, :, :hidden].set(
        weight_hh.astype(f32).reshape(hidden, 4, hidden))
    # permute to hidden-tile-major: per tile j the columns are [f_j|i_j|o_j|g_j]
    w = w.reshape(kp, 4, n_tiles, ht).transpose(0, 2, 1, 3).reshape(kp, 4 * hp)

    b = jnp.zeros((4, hp), f32).at[:, :hidden].set(
        bias.astype(f32).reshape(4, hidden))
    b = b.reshape(4, n_tiles, ht).transpose(1, 0, 2).reshape(1, 4 * hp)

    c0p = jnp.zeros((bp, hp), f32).at[:batch, :hidden].set(c0.astype(f32))

    # optional low-precision matmul operands (accumulation stays f32 in-kernel)
    xh = xh.astype(compute_dtype)
    w = w.astype(compute_dtype)

    h1p, c1p = pl.pallas_call(
        lstm_cell_kernel,
        out_shape=(
            jax.ShapeDtypeStruct((bp, hp), f32),
            jax.ShapeDtypeStruct((bp, hp), f32),
        ),
        grid=(n_tiles,),
        in_specs=[
            pl.BlockSpec((bp, kp), lambda j: (0, 0)),      # [x|h0], resident
            pl.BlockSpec((kp, 4 * ht), lambda j: (0, j)),  # weight tile
            pl.BlockSpec((1, 4 * ht), lambda j: (0, j)),   # bias tile
            pl.BlockSpec((bp, ht), lambda j: (0, j)),      # c0 tile
        ],
        out_specs=(
            pl.BlockSpec((bp, ht), lambda j: (0, j)),      # h1 tile
            pl.BlockSpec((bp, ht), lambda j: (0, j)),      # c1 tile
        ),
        compiler_params=pltpu.CompilerParams(
            dimension_semantics=("parallel",),             # 2 TCs on v7x
            vmem_limit_bytes=32 * 1024 * 1024,             # raise v5e's 16 MiB
        ),
    )(xh, w, b, c0p)

    return h1p[:batch, :hidden], c1p[:batch, :hidden]


def reference_lstm_cell(input_, h0, c0, weight_ih, weight_hh, bias):
    """Pure-JAX reference mirroring the PyTorch forward."""
    wh_b = h0 @ weight_hh + bias[None, :]
    wi = input_ @ weight_ih
    gates = wh_b + wi
    f, i, o, g = jnp.split(gates, 4, axis=1)
    c1 = jax.nn.sigmoid(f) * c0 + jax.nn.sigmoid(i) * jnp.tanh(g)
    h1 = jax.nn.sigmoid(o) * jnp.tanh(c1)
    return h1, c1


if __name__ == "__main__":
    batch = 2
    input_size = 16
    hidden_size = 32

    key = jax.random.PRNGKey(0)
    k_wih, k_whh, k_x, k_h, k_c = jax.random.split(key, 5)

    # reset_parameters(): weights ~ U(-stdv, stdv), bias = 0
    stdv = 1.0 / math.sqrt(hidden_size)
    weight_ih = jax.random.uniform(k_wih, (input_size, 4 * hidden_size),
                                   jnp.float32, minval=-stdv, maxval=stdv)
    weight_hh = jax.random.uniform(k_whh, (hidden_size, 4 * hidden_size),
                                   jnp.float32, minval=-stdv, maxval=stdv)
    bias = jnp.zeros((4 * hidden_size,), jnp.float32)

    x = jax.random.normal(k_x, (batch, input_size), jnp.float32)
    h0 = jax.random.normal(k_h, (batch, hidden_size), jnp.float32)
    c0 = jax.random.normal(k_c, (batch, hidden_size), jnp.float32)

    h1, c1 = lstm_cell(x, h0, c0, weight_ih, weight_hh, bias)
    jax.block_until_ready((h1, c1))

    h1_ref, c1_ref = reference_lstm_cell(x, h0, c0, weight_ih, weight_hh, bias)
    assert jnp.allclose(h1, h1_ref, atol=1e-5, rtol=1e-5)
    assert jnp.allclose(c1, c1_ref, atol=1e-5, rtol=1e-5)

    print("KERNEL_OK")
</pallas_src>

<mosaic_0001>
module attributes {stable_mosaic.version = 11 : i64} {
  func.func @lstm_cell_kernel(%arg0: i32, %arg1: memref<8x144xf32, #tpu.memory_space<vmem>>, %arg2: memref<144x512xf32, #tpu.memory_space<vmem>>, %arg3: memref<1x512xf32, #tpu.memory_space<vmem>>, %arg4: memref<8x128xf32, #tpu.memory_space<vmem>>, %arg5: memref<8x128xf32, #tpu.memory_space<vmem>>, %arg6: memref<8x128xf32, #tpu.memory_space<vmem>>) attributes {dimension_semantics = [#tpu.dimension_semantics<parallel>], iteration_bounds = array<i64: 1>, scalar_prefetch = 0 : i64, scratch_operands = 0 : i64, tpu.core_type = #tpu.core_type<tc>, window_params = [{pipeline_mode = #tpu.pipeline_mode<synchronous>, transform_indices = @transform_0, window_bounds = array<i64: 8, 144>}, {transform_indices = @transform_1, window_bounds = array<i64: 144, 512>}, {transform_indices = @transform_2, window_bounds = array<i64: 1, 512>}, {transform_indices = @transform_3, window_bounds = array<i64: 8, 128>}, {transform_indices = @transform_4, window_bounds = array<i64: 8, 128>}, {transform_indices = @transform_5, window_bounds = array<i64: 8, 128>}]} {
    %c0 = arith.constant 0 : index
    %c0_0 = arith.constant 0 : index
    %0 = vector.load %arg1[%c0, %c0_0] : memref<8x144xf32, #tpu.memory_space<vmem>>, vector<8x144xf32>
    %c0_1 = arith.constant 0 : index
    %c0_2 = arith.constant 0 : index
    %1 = vector.load %arg2[%c0_1, %c0_2] : memref<144x512xf32, #tpu.memory_space<vmem>>, vector<144x512xf32>
    %cst = arith.constant dense<0.000000e+00> : vector<8x512xf32>
    %2 = tpu.matmul %0, %1, %cst {dimension_numbers = #tpu.dot_dimension_numbers<[1], [0], [0], [1], [0, 0, 1, 1], [], []>} : vector<8x144xf32>, vector<144x512xf32>, vector<8x512xf32> -> vector<8x512xf32>
    %c0_3 = arith.constant 0 : index
    %c0_4 = arith.constant 0 : index
    %3 = vector.load %arg3[%c0_3, %c0_4] : memref<1x512xf32, #tpu.memory_space<vmem>>, vector<1x512xf32>
    %4 = vector.broadcast %3 : vector<1x512xf32> to vector<8x512xf32>
    %5 = arith.addf %2, %4 : vector<8x512xf32>
    %6 = vector.extract_strided_slice %5 {offsets = [0, 0], sizes = [8, 384], strides = [1, 1]} : vector<8x512xf32> to vector<8x384xf32>
    %7 = arith.negf %6 : vector<8x384xf32>
    %8 = math.exp %7 : vector<8x384xf32>
    %cst_5 = arith.constant 1.000000e+00 : f32
    %9 = vector.broadcast %cst_5 : f32 to vector<8x384xf32>
    %10 = arith.addf %9, %8 : vector<8x384xf32>
    %11 = arith.divf %9, %10 : vector<8x384xf32>
    %12 = vector.extract_strided_slice %5 {offsets = [0, 384], sizes = [8, 128], strides = [1, 1]} : vector<8x512xf32> to vector<8x128xf32>
    %13 = math.tanh %12 : vector<8x128xf32>
    %14 = vector.extract_strided_slice %11 {offsets = [0, 0], sizes = [8, 128], strides = [1, 1]} : vector<8x384xf32> to vector<8x128xf32>
    %15 = vector.extract_strided_slice %11 {offsets = [0, 128], sizes = [8, 128], strides = [1, 1]} : vector<8x384xf32> to vector<8x128xf32>
    %16 = vector.extract_strided_slice %11 {offsets = [0, 256], sizes = [8, 128], strides = [1, 1]} : vector<8x384xf32> to vector<8x128xf32>
    %c0_6 = arith.constant 0 : index
    %c0_7 = arith.constant 0 : index
    %17 = vector.load %arg4[%c0_6, %c0_7] : memref<8x128xf32, #tpu.memory_space<vmem>>, vector<8x128xf32>
    %18 = arith.mulf %14, %17 : vector<8x128xf32>
    %19 = arith.mulf %15, %13 : vector<8x128xf32>
    %20 = arith.addf %18, %19 : vector<8x128xf32>
    %21 = math.tanh %20 : vector<8x128xf32>
    %22 = arith.mulf %16, %21 : vector<8x128xf32>
    %c0_8 = arith.constant 0 : index
    %c0_9 = arith.constant 0 : index
    %23 = vector.load %arg6[%c0_8, %c0_9] : memref<8x128xf32, #tpu.memory_space<vmem>>, vector<8x128xf32>
    tpu.vector_store %arg6[%c0_8, %c0_9], %20 {strides = array<i32>} : memref<8x128xf32, #tpu.memory_space<vmem>>, vector<8x128xf32>,
    %c0_10 = arith.constant 0 : index
    %c0_11 = arith.constant 0 : index
    %24 = vector.load %arg5[%c0_10, %c0_11] : memref<8x128xf32, #tpu.memory_space<vmem>>, vector<8x128xf32>
    tpu.vector_store %arg5[%c0_10, %c0_11], %22 {strides = array<i32>} : memref<8x128xf32, #tpu.memory_space<vmem>>, vector<8x128xf32>,
    return
  }
  func.func @transform_0(%arg0: i32) -> (i32, i32) {
    %c0_i32 = arith.constant 0 : i32
    %c0_i32_0 = arith.constant 0 : i32
    %c0_i32_1 = arith.constant 0 : i32
    return %c0_i32, %c0_i32_0 : i32, i32
  }
  func.func @transform_1(%arg0: i32) -> (i32, i32) {
    %c0_i32 = arith.constant 0 : i32
    %c0_i32_0 = arith.constant 0 : i32
    return %c0_i32, %arg0 : i32, i32
  }
  func.func @transform_2(%arg0: i32) -> (i32, i32) {
    %c0_i32 = arith.constant 0 : i32
    %c0_i32_0 = arith.constant 0 : i32
    return %c0_i32, %arg0 : i32, i32
  }
  func.func @transform_3(%arg0: i32) -> (i32, i32) {
    %c0_i32 = arith.constant 0 : i32
    %c0_i32_0 = arith.constant 0 : i32
    return %c0_i32, %arg0 : i32, i32
  }
  func.func @transform_4(%arg0: i32) -> (i32, i32) {
    %c0_i32 = arith.constant 0 : i32
    %c0_i32_0 = arith.constant 0 : i32
    return %c0_i32, %arg0 : i32, i32
  }
  func.func @transform_5(%arg0: i32) -> (i32, i32) {
    %c0_i32 = arith.constant 0 : i32
    %c0_i32_0 = arith.constant 0 : i32
    return %c0_i32, %arg0 : i32, i32
  }
}

</mosaic_0001>

<bundles_post_ra>
// kernel: tpu_custom_call.1
= control target key start
LH: loop header
LB: loop body
LE: loop exit
PB: predicated region body
PF: predicated region fallthrough
CT: control target
= control target key end

     0   :  { %11 = vsyncpa [#allocation3], 0  ;;  %s677_s0 = inlined_call_operand.hbm [shape: f32[8,144], index: 0, kind: input, shape index: {}]   ;;  %s678_s1 = inlined_call_operand.hbm [shape: f32[144,512], index: 1, kind: input, shape index: {}]   ;;  %s679_s2 = inlined_call_operand.hbm [shape: f32[1,512], index: 2, kind: input, shape index: {}]   ;;  %s680_s3 = inlined_call_operand.vmem [shape: f32[8,128], index: 3, kind: input, shape index: {}]   ;;  %s681_s4 = inlined_call_operand.hbm [shape: f32[8,128], index: 4, kind: output, shape index: {0}]   ;;  %s682_s5 = inlined_call_operand.hbm [shape: f32[8,128], index: 5, kind: output, shape index: {1}]  }
   0x1   :  { %12 = vsyncpa [#allocation6], 0 }
   0x2   :  { %13 = vsyncpa [#allocation4], 0 }
   0x3   :  { %14 = vsyncpa [#allocation10], 0  ;;  %s575_s18 = smov [#allocation5]   ;;  %s457_s22 = scalar_lea.hbm %s678_s1, 9216 }
   0x4   :  { %s30_s19 = sshll.u32 %s575_s18, 4  ;;  %p458_p0 = scmp.ne.s32.totalorder %s678_s1, %s457_s22  ;;  %s31_s19 = int_to_ptr.vmem [resolvable:$true] %s30_s19 }
   0x5   :  { %p461_p1 = scmp.lt.u32.totalorder %s457_s22, %s678_s1 }
   0x7   :  { %p463_p2 = pnand %p461_p1, %p458_p0 }
   0x9   :  { %466 = shalt.err (!%p463_p2)
}
   0xa   :  { %s467_s27 = scalar_lea.vmem %s31_s19, 9216  ;;  %p472_p4 = scmp.lt.s32.totalorder %s31_s19, %s31_s19 }
   0xb   :  { %p468_p3 = scmp.ne.s32.totalorder %s31_s19, %s467_s27  ;;  %p473_p5 = scmp.lt.s32.totalorder %s467_s27, %s467_s27 }
   0xd   :  { %p474_p6 = por %p473_p5, %p472_p4 }
   0xf   :  { %p475_p7 = pnand %p474_p6, %p468_p3 }
  0x11   :  { %478 = shalt.err (!%p475_p7)
}
  0x12   :  { %s576_s28 = smov 512   ;;  %s577_s29 = smov 32  }
  0x13   :  { %36 = dma.hbm_to_vmem [thread:$0]  %s678_s1, 9216, %s31_s19, [#allocation6], %s576_s28, %s576_s28, %s577_s29  }
  0x14   :  { %s578_s7 = smov [#allocation2]   ;;  %s579_s9 = smov [#allocation7]  }
  0x15   :  { %s21_s8 = sshll.u32 %s578_s7, 4  ;;  %s43_s10 = sshll.u32 %s579_s9, 4  ;;  %s22_s8 = int_to_ptr.vmem [resolvable:$true] %s21_s8  ;;  %s44_s10 = int_to_ptr.vmem [resolvable:$true] %s43_s10 }
  0x16   :  { %s479_s13 = scalar_lea.hbm %s677_s0, 256 }
  0x17   :  { %p480_p8 = scmp.ne.s32.totalorder %s677_s0, %s479_s13  ;;  %p483_p9 = scmp.lt.u32.totalorder %s479_s13, %s677_s0 }
  0x19   :  { %p485_p10 = pnand %p483_p9, %p480_p8 }
  0x1b   :  { %488 = shalt.err (!%p485_p10)
}
  0x1c   :  { %s489_s1 = scalar_lea.vmem %s22_s8, 256  ;;  %p494_p12 = scmp.lt.s32.totalorder %s22_s8, %s22_s8 }
  0x1d   :  { %p490_p11 = scmp.ne.s32.totalorder %s22_s8, %s489_s1  ;;  %p495_p13 = scmp.lt.s32.totalorder %s489_s1, %s489_s1 }
  0x1f   :  { %p496_p0 = por %p495_p13, %p494_p12 }
  0x21   :  { %p497_p1 = pnand %p496_p0, %p490_p11 }
  0x23   :  { %500 = shalt.err (!%p497_p1)
}
  0x24   :  { %24 = dma.hbm_to_vmem [thread:$0]  %s677_s0, 256, %s22_s8, [#allocation3]  }
  0x25   :  { %s501_s22 = scalar_lea.hbm %s679_s2, 64 }
  0x26   :  { %p502_p2 = scmp.ne.s32.totalorder %s679_s2, %s501_s22  ;;  %p505_p3 = scmp.lt.u32.totalorder %s501_s22, %s679_s2 }
  0x28   :  { %p507_p4 = pnand %p505_p3, %p502_p2 }
  0x2a   :  { %510 = shalt.err (!%p507_p4)
}
  0x2b   :  { %s511_s27 = scalar_lea.vmem %s44_s10, 64  ;;  %p516_p6 = scmp.lt.s32.totalorder %s44_s10, %s44_s10 }
  0x2c   :  { %p512_p5 = scmp.ne.s32.totalorder %s44_s10, %s511_s27  ;;  %p517_p7 = scmp.lt.s32.totalorder %s511_s27, %s511_s27 }
  0x2e   :  { %p518_p8 = por %p517_p7, %p516_p6 }
  0x30   :  { %p519_p9 = pnand %p518_p8, %p512_p5 }
  0x32   :  { %522 = shalt.err (!%p519_p9)
}
  0x33   :  { %46 = dma.hbm_to_vmem [thread:$0]  %s679_s2, 64, %s44_s10, [#allocation6]  }
  0x34   :  { %567 = dma.done.wait [#allocation3], 256  }
  0x35   :  { %568 = vsyncadd [#allocation3], 4294967040 }
  0x36   :  { %569 = dma.done.wait [#allocation6], 9280  }
  0x37   :  { %570 = vsyncadd [#allocation6], 4294958016  ;;  %v61_v0 = vld [vmem:[#allocation5 + $0x8] sm:$0xff]  ;;  %v60_v2 = vld [vmem:[#allocation5] sm:$0xff]  ;;  %vm154_vm0 = vcmask 130048   ;;  %s580_s30 = smov [#allocation9]  }
  0x38   :  { %v65_v1 = vld [vmem:[#allocation5 + $0x28] sm:$0xff]  ;;  %v64_v4 = vld [vmem:[#allocation5 + $0x20] sm:$0xff]  ;;  %v63_v18 = vld [vmem:[#allocation5 + $0x18] sm:$0xff]  ;;  %s343_s6 = sshll.u32 %s580_s30, 4  ;;  %s344_s6 = int_to_ptr.vmem [resolvable:$true] %s343_s6 }
  0x39   :  { %v362_v3 = vpack.c.bf16 %v65_v1, %v61_v0  ;;  %v69_v5 = vld [vmem:[#allocation5 + $0x48] sm:$0xff]  ;;  %v364_v7 = vpack.c.bf16 %v64_v4, %v60_v2  ;;  %v68_v9 = vld [vmem:[#allocation5 + $0x40] sm:$0xff]  ;;  %v67_v19 = vld [vmem:[#allocation5 + $0x38] sm:$0xff]  ;;  %s523_s7 = scalar_lea.vmem %s344_s6, 128  ;;  %p528_p11 = scmp.lt.s32.totalorder %s344_s6, %s344_s6 }
  0x3a   :  { %v73_v6 = vld [vmem:[#allocation5 + $0x68] sm:$0xff]  ;;  %v72_v10 = vld [vmem:[#allocation5 + $0x60] sm:$0xff]  ;;  %v398_v21 = vpack.c.bf16 %v67_v19, %v63_v18  ;;  %v62_v22 = vld [vmem:[#allocation5 + $0x10] sm:$0xff]  ;;  %p524_p10 = scmp.ne.s32.totalorder %s344_s6, %s523_s7  ;;  %p529_p12 = scmp.lt.s32.totalorder %s523_s7, %s523_s7 }
  0x3b   :  { %v366_v8 = vpack.c.bf16 %v73_v6, %v69_v5  ;;  %v77_v11 = vld [vmem:[#allocation5 + $0x88] sm:$0xff]  ;;  %363 = vmatprep.subr.bf16.mxu0 %v362_v3  ;;  %v368_v13 = vpack.c.bf16 %v72_v10, %v68_v9  ;;  %v76_v14 = vld [vmem:[#allocation5 + $0x80] sm:$0xff]  ;;  %v66_v23 = vld [vmem:[#allocation5 + $0x30] sm:$0xff] }
  0x3c   :  { %v81_v12 = vld [vmem:[#allocation5 + $0xa8] sm:$0xff]  ;;  %365 = vmatpush1.bf16.msra.mxu0 %v364_v7  ;;  %v80_v15 = vld [vmem:[#allocation5 + $0xa0] sm:$0xff]  ;;  %v400_v24 = vpack.c.bf16 %v66_v23, %v62_v22  ;;  %399 = vmatprep.subr.bf16.mxu1 %v398_v21  ;;  %v71_v26 = vld [vmem:[#allocation5 + $0x58] sm:$0xff]  ;;  %p530_p13 = por %p529_p12, %p528_p11 }
  0x3d   :  { %367 = vmatprep.subr.bf16.mxu0 %v366_v8  ;;  %v370_v16 = vpack.c.bf16 %v81_v12, %v77_v11  ;;  %v85_v17 = vld [vmem:[#allocation5 + $0xc8] sm:$0xff]  ;;  %v372_v25 = vpack.c.bf16 %v80_v15, %v76_v14  ;;  %v75_v27 = vld [vmem:[#allocation5 + $0x78] sm:$0xff]  ;;  %v70_v28 = vld [vmem:[#allocation5 + $0x50] sm:$0xff] }
  0x3e   :  { %v89_v20 = vld [vmem:[#allocation5 + $0xe8] sm:$0xff]  ;;  %v84_v30 = vld [vmem:[#allocation5 + $0xc0] sm:$0xff]  ;;  %401 = vmatpush1.bf16.msra.mxu1 %v400_v24  ;;  %v402_v32 = vpack.c.bf16 %v75_v27, %v71_v26  ;;  %v74_v33 = vld [vmem:[#allocation5 + $0x70] sm:$0xff]  ;;  %p531_p0 = pnand %p530_p13, %p524_p10 }
  0x3f   :  { %v374_v29 = vpack.c.bf16 %v89_v20, %v85_v17  ;;  %v88_v31 = vld [vmem:[#allocation5 + $0xe0] sm:$0xff]  ;;  %v93_v34 = vld [vmem:[#allocation5 + $0x108] sm:$0xff]  ;;  %v404_v36 = vpack.c.bf16 %v74_v33, %v70_v28  ;;  %v79_v37 = vld [vmem:[#allocation5 + $0x98] sm:$0xff] }
  0x40   :  { %369 = vmatpush1.bf16.msra.mxu0 %v368_v13  ;;  %v97_v35 = vld [vmem:[#allocation5 + $0x128] sm:$0xff]  ;;  %403 = vmatprep.subr.bf16.mxu1 %v402_v32  ;;  %v83_v38 = vld [vmem:[#allocation5 + $0xb8] sm:$0xff]  ;;  %v78_v39 = vld [vmem:[#allocation5 + $0x90] sm:$0xff]  ;;  %v376_v41 = vpack.c.bf16 %v88_v31, %v84_v30 }
  0x41   :  { %371 = vmatprep.subr.bf16.mxu0 %v370_v16  ;;  %v82_v40 = vld [vmem:[#allocation5 + $0xb0] sm:$0xff]  ;;  %v92_v42 = vld [vmem:[#allocation5 + $0x100] sm:$0xff]  ;;  %v406_v44 = vpack.c.bf16 %v83_v38, %v79_v37  ;;  %v378_v45 = vpack.c.bf16 %v97_v35, %v93_v34  ;;  %v101_v46 = vld [vmem:[#allocation5 + $0x148] sm:$0xff] }
  0x42   :  { %v96_v43 = vld [vmem:[#allocation5 + $0x120] sm:$0xff]  ;;  %405 = vmatpush1.bf16.msra.mxu1 %v404_v36  ;;  %v408_v47 = vpack.c.bf16 %v82_v40, %v78_v39  ;;  %v87_v48 = vld [vmem:[#allocation5 + $0xd8] sm:$0xff]  ;;  %v105_v50 = vld [vmem:[#allocation5 + $0x168] sm:$0xff] }
  0x43   :  { %v91_v49 = vld [vmem:[#allocation5 + $0xf8] sm:$0xff]  ;;  %407 = vmatprep.subr.bf16.mxu1 %v406_v44  ;;  %v86_v52 = vld [vmem:[#allocation5 + $0xd0] sm:$0xff]  ;;  %v380_v54 = vpack.c.bf16 %v96_v43, %v92_v42  ;;  %v382_v57 = vpack.c.bf16 %v105_v50, %v101_v46  ;;  %v100_v58 = vld [vmem:[#allocation5 + $0x140] sm:$0xff]  ;;  %v134_v46 = vlaneseq }
  0x44   :  { %373 = vmatpush1.bf16.msra.mxu0 %v372_v25  ;;  %v410_v51 = vpack.c.bf16 %v91_v49, %v87_v48  ;;  %v90_v53 = vld [vmem:[#allocation5 + $0xf0] sm:$0xff]  ;;  %v95_v55 = vld [vmem:[#allocation5 + $0x118] sm:$0xff]  ;;  %v104_v59 = vld [vmem:[#allocation5 + $0x160] sm:$0xff] }
  0x45   :  { %375 = vmatprep.subr.bf16.mxu0 %v374_v29  ;;  %v99_v56 = vld [vmem:[#allocation5 + $0x138] sm:$0xff]  ;;  %v109_v60 = vld [vmem:[#allocation5 + $0x188] sm:$0xff]  ;;  %v412_v61 = vpack.c.bf16 %v90_v53, %v86_v52  ;;  %v94_v0 = vld [vmem:[#allocation5 + $0x110] sm:$0xff]  ;;  %v384_v5 = vpack.c.bf16 %v104_v59, %v100_v58 }
  0x46   :  { %409 = vmatpush1.bf16.msra.mxu1 %v408_v47  ;;  %v113_v62 = vld [vmem:[#allocation5 + $0x1a8] sm:$0xff]  ;;  %v414_v63 = vpack.c.bf16 %v99_v56, %v95_v55  ;;  %v98_v1 = vld [vmem:[#allocation5 + $0x130] sm:$0xff]  ;;  %v103_v2 = vld [vmem:[#allocation5 + $0x158] sm:$0xff]  ;;  %v135_v47 = vshrl.u32 %v134_v46, 7 }
  0x47   :  { %411 = vmatprep.subr.bf16.mxu1 %v410_v51  ;;  %v107_v3 = vld [vmem:[#allocation5 + $0x178] sm:$0xff]  ;;  %v386_v6 = vpack.c.bf16 %v113_v62, %v109_v60  ;;  %v108_v7 = vld [vmem:[#allocation5 + $0x180] sm:$0xff]  ;;  %v117_v9 = vld [vmem:[#allocation5 + $0x1c8] sm:$0xff]  ;;  %v416_v10 = vpack.c.bf16 %v98_v1, %v94_v0 }
  0x48   :  { %377 = vmatpush1.bf16.msra.mxu0 %v376_v41  ;;  %v59_v4 = vld [vmem:[#allocation2 + $0x8] sm:$0xff]  ;;  %v112_v8 = vld [vmem:[#allocation5 + $0x1a0] sm:$0xff]  ;;  %v121_v11 = vld [vmem:[#allocation5 + $0x1e8] sm:$0xff]  ;;  %v418_v12 = vpack.c.bf16 %v107_v3, %v103_v2  ;;  %v136_v48 = vsub.s32 0, %v135_v47  ;;  %v140_v50 = vsub.s32 1, %v135_v47  ;;  %v144_v53 = vsub.s32 2, %v135_v47 }
  0x49   :  { %379 = vmatprep.subr.bf16.mxu0 %v378_v45  ;;  %357 = vmatprep.mubr.msk.f32.mxu0 %vm154_vm0, %v59_v4  ;;  %v102_v13 = vld [vmem:[#allocation5 + $0x150] sm:$0xff]  ;;  %v111_v15 = vld [vmem:[#allocation5 + $0x198] sm:$0xff]  ;;  %v388_v17 = vpack.c.bf16 %v112_v8, %v108_v7  ;;  %v390_v18 = vpack.c.bf16 %v121_v11, %v117_v9  ;;  %v116_v19 = vld [vmem:[#allocation5 + $0x1c0] sm:$0xff]  ;;  %v148_v62 = vsub.s32 3, %v135_v47 }
  0x4a   :  { %413 = vmatpush1.bf16.msra.mxu1 %v412_v61  ;;  %v106_v14 = vld [vmem:[#allocation5 + $0x170] sm:$0xff]  ;;  %358 = vmatprep.mubr.msk.f32.mxu1 %vm154_vm0, %v59_v4  ;;  %v115_v16 = vld [vmem:[#allocation5 + $0x1b8] sm:$0xff]  ;;  %v120_v20 = vld [vmem:[#allocation5 + $0x1e0] sm:$0xff] }
  0x4b   :  { %415 = vmatprep.subr.bf16.mxu1 %v414_v63  ;;  %v125_v21 = vld [vmem:[#allocation5 + $0x208] sm:$0xff]  ;;  %v420_v22 = vpack.c.bf16 %v106_v14, %v102_v13  ;;  %v422_v24 = vpack.c.bf16 %v115_v16, %v111_v15  ;;  %v110_v25 = vld [vmem:[#allocation5 + $0x190] sm:$0xff]  ;;  %v119_v27 = vld [vmem:[#allocation5 + $0x1d8] sm:$0xff]  ;;  %v392_v29 = vpack.c.bf16 %v120_v20, %v116_v19 }
  0x4c   :  { %381 = vmatpush1.bf16.msra.mxu0 %v380_v54  ;;  %v129_v23 = vld [vmem:[#allocation5 + $0x228] sm:$0xff]  ;;  %v114_v26 = vld [vmem:[#allocation5 + $0x1b0] sm:$0xff]  ;;  %v123_v28 = vld [vmem:[#allocation5 + $0x1f8] sm:$0xff] }
  0x4d   :  { %383 = vmatprep.subr.bf16.mxu0 %v382_v57  ;;  %v394_v30 = vpack.c.bf16 %v129_v23, %v125_v21  ;;  %v124_v31 = vld [vmem:[#allocation5 + $0x200] sm:$0xff]  ;;  %v424_v33 = vpack.c.bf16 %v114_v26, %v110_v25  ;;  %v426_v34 = vpack.c.bf16 %v123_v28, %v119_v27  ;;  %v118_v35 = vld [vmem:[#allocation5 + $0x1d0] sm:$0xff]  ;;  %v127_v37 = vld [vmem:[#allocation5 + $0x218] sm:$0xff] }
  0x4e   :  { %417 = vmatpush1.bf16.msra.mxu1 %v416_v10  ;;  %v128_v32 = vld [vmem:[#allocation5 + $0x220] sm:$0xff]  ;;  %v122_v36 = vld [vmem:[#allocation5 + $0x1f0] sm:$0xff]  ;;  %v131_v38 = vld [vmem:[#allocation5 + $0x238] sm:$0xff] }
  0x4f   :  { %419 = vmatprep.subr.bf16.mxu1 %v418_v12  ;;  %v396_v39 = vpack.c.bf16 %v128_v32, %v124_v31  ;;  %v428_v40 = vpack.c.bf16 %v122_v36, %v118_v35  ;;  %v430_v41 = vpack.c.bf16 %v131_v38, %v127_v37  ;;  %v126_v42 = vld [vmem:[#allocation5 + $0x210] sm:$0xff]  ;;  %v132_v49 = vld [vmem:[#allocation7] sm:$0xf] }
  0x50   :  { %385 = vmatpush1.bf16.msra.mxu0 %v384_v5  ;;  %v130_v43 = vld [vmem:[#allocation5 + $0x230] sm:$0xff]  ;;  %v137_v51 = vrot.slane %v132_v49, %v136_v48  ;;  %v141_v52 = vrot.slane %v132_v49, %v140_v50  ;;  %v145_v59 = vrot.slane %v132_v49, %v144_v53  ;;  %v149_v1 = vrot.slane %v132_v49, %v148_v62 }
  0x51   :  { %387 = vmatprep.subr.bf16.mxu0 %v386_v6  ;;  %v58_v44 = vld [vmem:[#allocation2] sm:$0xff]  ;;  %v432_v45 = vpack.c.bf16 %v130_v43, %v126_v42 }
  0x52   :  { %421 = vmatpush1.bf16.msra.mxu1 %v420_v22  ;;  %v319_v9 = vld [vmem:[%s680_s3] sm:$0xff] }
  0x53   :  { %423 = vmatprep.subr.bf16.mxu1 %v422_v24 }
  0x54   :  { %389 = vmatpush1.bf16.msra.mxu0 %v388_v17 }
  0x55   :  { %391 = vmatprep.subr.bf16.mxu0 %v390_v18 }
  0x56   :  { %425 = vmatpush1.bf16.msra.mxu1 %v424_v33 }
  0x57   :  { %427 = vmatprep.subr.bf16.mxu1 %v426_v34 }
  0x58   :  { %393 = vmatpush1.bf16.msra.mxu0 %v392_v29 }
  0x59   :  { %395 = vmatprep.subr.bf16.mxu0 %v394_v30 }
  0x5a   :  { %429 = vmatpush1.bf16.msra.mxu1 %v428_v40 }
  0x5b   :  { %431 = vmatprep.subr.bf16.mxu1 %v430_v41 }
  0x5c   :  { %397 = vmatpush1.bf16.msra.mxu0 %v396_v39 }
  0x5e   :  { %433 = vmatpush1.bf16.msra.mxu1 %v432_v45 }
  0x5f   :  { %223 = vmatmul.mubr.f32.vlgmr.msra.gmra.mrb[0].mxu0 %v58_v44 }
  0x61   :  { %294 = vmatmul.mubr.f32.vlgmr.msra.gmra.mrb[0].mxu1 %v58_v44 }
 0x132   :  { %v224_v54 = vpop.f32.mrb[0].mxu0 }
 0x133   :  { %v225_v55 = vadd.f32 %v224_v54, %v137_v51  ;;  %v226_v56 = vpop.f32.mrb[1].mxu0 }
 0x134   :  { %v227_v57 = vadd.f32 %v226_v56, %v141_v52  ;;  %v295_v61 = vpop.f32.mrb[0].mxu1 }
 0x135   :  { %v359_v58 = vmul.f32 -1.442695, %v225_v55  ;;  %v297_v63 = vpop.f32.mrb[1].mxu1  ;;  %v296_v0 = vadd.f32 %v295_v61, %v145_v59 }
 0x136   :  { %v360_v60 = vmul.f32 -1.442695, %v227_v57  ;;  %v298_v3 = vadd.f32 %v297_v63, %v149_v1 }
 0x137   :  { %441 = vpow2.f32 %v359_v58  ;;  %v361_v2 = vmul.f32 -1.442695, %v296_v0 }
 0x138   :  { %443 = vpow2.f32 %v360_v60 }
 0x139   :  { %445 = vpow2.f32 %v361_v2 }
 0x13a   :  { %447 = vtanh.f32 %v298_v3 }
 0x141   :  { %v442_v4 = vpop.eup %441 }
 0x142   :  { %v444_v5 = vpop.eup %443  ;;  %v309_v6 = vadd.f32 1.0, %v442_v4 }
 0x143   :  { %v310_v7 = vadd.f32 1.0, %v444_v5  ;;  %v446_v8 = vpop.eup %445 }
 0x144   :  { %449 = vrcp.f32 %v309_v6  ;;  %v448_v10 = vpop.eup %447  ;;  %v311_v12 = vadd.f32 1.0, %v446_v8 }
 0x145   :  { %451 = vrcp.f32 %v310_v7 }
 0x146   :  { %453 = vrcp.f32 %v311_v12 }
 0x14e   :  { %v450_v11 = vpop.eup %449 }
 0x14f   :  { %v452_v13 = vpop.eup %451  ;;  %v320_v14 = vmul.f32 %v450_v11, %v319_v9 }
 0x150   :  { %v321_v15 = vmul.f32 %v452_v13, %v448_v10 }
 0x152   :  { %v322_v16 = vadd.f32 %v321_v15, %v320_v14 }
 0x154   :  { %325 = vst [vmem:[#allocation9] sm:$0xff] %v322_v16  ;;  %455 = vtanh.f32 %v322_v16 }
 0x155   :  { %534 = shalt.err (!%p531_p0)
}
 0x156   :  { %s535_s9 = scalar_lea.hbm %s682_s5, 128 }
 0x157   :  { %p536_p1 = scmp.ne.s32.totalorder %s682_s5, %s535_s9  ;;  %p539_p2 = scmp.lt.u32.totalorder %s535_s9, %s682_s5 }
 0x159   :  { %p541_p3 = pnand %p539_p2, %p536_p1 }
 0x15b   :  { %544 = shalt.err (!%p541_p3)
}
 0x15c   :  { %346 = dma.vmem_to_hbm [thread:$0]  %s344_s6, 128, %s682_s5, [#allocation10]   ;;  %v454_v17 = vpop.eup %453 }
 0x15d   :  { %s581_s16 = smov [#allocation8]  }
 0x15e   :  { %s333_s17 = sshll.u32 %s581_s16, 4  ;;  %v456_v18 = vpop.eup %455  ;;  %s334_s17 = int_to_ptr.vmem [resolvable:$true] %s333_s17 }
 0x15f   :  { %v324_v19 = vmul.f32 %v456_v18, %v454_v17  ;;  %s545_s1 = scalar_lea.vmem %s334_s17, 128  ;;  %p550_p5 = scmp.lt.s32.totalorder %s334_s17, %s334_s17 }
 0x160   :  { %p546_p4 = scmp.ne.s32.totalorder %s334_s17, %s545_s1  ;;  %p551_p6 = scmp.lt.s32.totalorder %s545_s1, %s545_s1 }
 0x161   :  { %326 = vst [vmem:[#allocation8] sm:$0xff] %v324_v19 }
 0x162   :  { %p552_p7 = por %p551_p6, %p550_p5 }
 0x164   :  { %p553_p8 = pnand %p552_p7, %p546_p4 }
 0x166   :  { %556 = shalt.err (!%p553_p8)
}
 0x167   :  { %s557_s20 = scalar_lea.hbm %s681_s4, 128 }
 0x168   :  { %p558_p9 = scmp.ne.s32.totalorder %s681_s4, %s557_s20  ;;  %p561_p10 = scmp.lt.u32.totalorder %s557_s20, %s681_s4 }
 0x16a   :  { %p563_p11 = pnand %p561_p10, %p558_p9 }
 0x16c   :  { %566 = shalt.err (!%p563_p11)
}
 0x16d   :  { %336 = dma.vmem_to_hbm [thread:$0]  %s334_s17, 128, %s681_s4, [#allocation4]  }
 0x16e   :  { %571 = dma.done.wait [#allocation4], 128  }
 0x16f   :  { %572 = vsyncadd [#allocation4], 4294967168 }
 0x170   :  { %573 = dma.done.wait [#allocation10], 128  }
 0x171   :  { %574 = vsyncadd [#allocation10], 4294967168 }
 0x172   :  { %353 = vsyncpa [#allocation3], 1 }
 0x173   :  { %354 = vsyncpa [#allocation6], 1 }
 0x174   :  { %355 = vsyncpa [#allocation4], 1 }
 0x175   :  { %356 = vsyncpa [#allocation10], 1 }

</bundles_post_ra>
